<compile_context>
chip_gen: v7x
topology: tpu7x:2x2x1
jax: 0.10.0
libtpu: 0.0.40
codegen_flags: <defaults>
</compile_context>

<pallas_src>
import jax
import jax.numpy as jnp
from jax import lax
from jax.experimental import pallas as pl
from jax.experimental.pallas import tpu as pltpu

_LANES = 128
_SUBLANES = 8
_MAX_TILE = 256  # MXU-friendly tile (2x256x256 on v6e/v7x, 4x128^2 on v5e).


def _round_up(n, m):
    return ((n + m - 1) // m) * m


# --------------------------- kernel 1: fused QKV projection -----------------

def _make_proj_kernel(dq_p, dv_p):
    """x_tile @ [Wq*scale | Wk | Wv] in one MXU matmul; writes Q, K, V tiles."""

    def kernel(x_ref, w_ref, q_ref, k_ref, v_ref):
        qkv = jnp.dot(x_ref[...], w_ref[...],
                      preferred_element_type=jnp.float32)
        # Static, 128-lane-aligned slices of the fused projection.
        q_ref[...] = qkv[:, :dq_p].astype(q_ref.dtype)
        k_ref[...] = qkv[:, dq_p:2 * dq_p].astype(k_ref.dtype)
        v_ref[...] = qkv[:, 2 * dq_p:2 * dq_p + dv_p].astype(v_ref.dtype)

    return kernel


# --------------------------- kernel 2: flash attention ----------------------

def _make_flash_kernel(seq, seq_p, tk):
    """Online-softmax attention over (q_tile, kv_tile) grid."""
    need_mask = seq_p != seq

    def kernel(q_ref, k_ref, v_ref, o_ref, m_sc, l_sc, acc_sc):
        kv = pl.program_id(1)

        @pl.when(kv == 0)
        def _():
            m_sc[...] = jnp.full_like(m_sc, -1e30)
            l_sc[...] = jnp.zeros_like(l_sc)
            acc_sc[...] = jnp.zeros_like(acc_sc)

        # Q @ K^T with the transpose folded into the MXU op; bf16 (or f32)
        # operands, f32 accumulation. Scale is already folded into Q.
        s = lax.dot_general(q_ref[...], k_ref[...], (((1,), (1,)), ((), ())),
                            preferred_element_type=jnp.float32)   # (tq, tk)

        if need_mask:
            # Mask padded key columns (f32 constant; stats stay f32).
            col = kv * tk + lax.broadcasted_iota(jnp.int32, s.shape, 1)
            s = jnp.where(col < seq, s, jnp.float32(-1e30))

        m_prev = m_sc[...]
        m_new = jnp.maximum(m_prev, jnp.max(s, axis=-1, keepdims=True))
        alpha = jnp.exp(m_prev - m_new)
        p = jnp.exp(s - m_new)                                     # f32
        l_sc[...] = alpha * l_sc[...] + jnp.sum(p, axis=-1, keepdims=True)
        acc_sc[...] = alpha * acc_sc[...] + jnp.dot(
            p.astype(v_ref.dtype), v_ref[...],
            preferred_element_type=jnp.float32)
        m_sc[...] = m_new

        @pl.when(kv == pl.num_programs(1) - 1)
        def _():
            o_ref[...] = (acc_sc[...] *
                          pl.reciprocal(l_sc[...], approx=True)
                          ).astype(o_ref.dtype)

    return kernel


# --------------------------- wrapper -----------------------------------------

def self_attention(x, w_query, w_key, w_value, *,
                   compute_dtype=jnp.bfloat16, out_dtype=None):
    """Pallas self-attention. x: (seq, d_in); weights: (d_in, d_out_*).

    compute_dtype is the MXU-operand dtype (bf16 is native on v5e/v6e/v7x;
    accumulation and softmax statistics are always f32). out_dtype defaults to
    x.dtype; pass bf16 to halve the output writeback if downstream allows it.
    """
    seq, d_in = x.shape
    d_kq = w_query.shape[1]
    assert w_key.shape == (d_in, d_kq)
    d_v = w_value.shape[1]
    if out_dtype is None:
        out_dtype = x.dtype

    # Lane-dense padded head dims.
    dq_p = _round_up(d_kq, _LANES)
    dv_p = _round_up(d_v, _LANES)
    wcols = 2 * dq_p + dv_p

    # Tile sizes: one tile for tiny sequences, 256 otherwise.
    tile = _MAX_TILE if seq >= _MAX_TILE else _round_up(seq, _SUBLANES)
    seq_p = _round_up(seq, tile)
    tq = tk = tile
    num_q = seq_p // tq
    num_kv = seq_p // tk

    scale = 1.0 / (d_kq ** 0.5)

    # Fused, column-padded QKV weight; 1/sqrt(d_kq) folded into the Q segment.
    def _pad_cols(w, cols):
        return jnp.pad(w, ((0, 0), (0, cols - w.shape[1])))

    w_qkv = jnp.concatenate([
        _pad_cols(w_query * jnp.float32(scale), dq_p),
        _pad_cols(w_key, dq_p),
        _pad_cols(w_value, dv_p),
    ], axis=1).astype(compute_dtype)

    # Pad the sequence only when needed (padded keys are masked in-kernel,
    # padded query rows are sliced off below).
    if seq_p != seq:
        x_p = jnp.pad(x, ((0, seq_p - seq), (0, 0)))
    else:
        x_p = x
    x_p = x_p.astype(compute_dtype)

    # ---- kernel 1: fused QKV projection ----
    q, k, v = pl.pallas_call(
        _make_proj_kernel(dq_p, dv_p),
        out_shape=(
            jax.ShapeDtypeStruct((seq_p, dq_p), compute_dtype),
            jax.ShapeDtypeStruct((seq_p, dq_p), compute_dtype),
            jax.ShapeDtypeStruct((seq_p, dv_p), compute_dtype),
        ),
        grid=(num_q,),
        in_specs=[
            pl.BlockSpec((tq, d_in), lambda i: (i, 0)),
            pl.BlockSpec((d_in, wcols), lambda i: (0, 0)),
        ],
        out_specs=(
            pl.BlockSpec((tq, dq_p), lambda i: (i, 0)),
            pl.BlockSpec((tq, dq_p), lambda i: (i, 0)),
            pl.BlockSpec((tq, dv_p), lambda i: (i, 0)),
        ),
        compiler_params=pltpu.CompilerParams(
            dimension_semantics=("parallel",)),
    )(x_p, w_qkv)

    # ---- kernel 2: flash attention (q tiles parallel, kv reduction last) ----
    out_p = pl.pallas_call(
        _make_flash_kernel(seq, seq_p, tk),
        out_shape=jax.ShapeDtypeStruct((seq_p, dv_p), out_dtype),
        grid=(num_q, num_kv),
        in_specs=[
            pl.BlockSpec((tq, dq_p), lambda qi, ki: (qi, 0)),
            pl.BlockSpec((tk, dq_p), lambda qi, ki: (ki, 0)),
            pl.BlockSpec((tk, dv_p), lambda qi, ki: (ki, 0)),
        ],
        out_specs=pl.BlockSpec((tq, dv_p), lambda qi, ki: (qi, 0)),
        scratch_shapes=[
            pltpu.VMEM((tq, 1), jnp.float32),      # running max m
            pltpu.VMEM((tq, 1), jnp.float32),      # running denom l
            pltpu.VMEM((tq, dv_p), jnp.float32),   # running accumulator
        ],
        compiler_params=pltpu.CompilerParams(
            dimension_semantics=("parallel", "arbitrary")),
    )(q, k, v)

    return out_p[:seq, :d_v]


# --------------------------- references --------------------------------------

def self_attention_ref(x, w_query, w_key, w_value):
    """Pure-JAX reference mirroring the PyTorch forward (f32, high precision)."""
    hi = lax.Precision.HIGHEST
    d_out_kq = w_query.shape[1]
    keys = jnp.dot(x, w_key, precision=hi)
    queries = jnp.dot(x, w_query, precision=hi)
    values = jnp.dot(x, w_value, precision=hi)
    scores = jnp.dot(queries, keys.T, precision=hi)
    weights = jax.nn.softmax(scores / (d_out_kq ** 0.5), axis=-1)
    return jnp.dot(weights, values, precision=hi)


def self_attention_ref_rounded(x, w_query, w_key, w_value, compute_dtype):
    """Reference reproducing the kernel's bf16 storage roundings (f32 acc)."""
    d_kq = w_query.shape[1]
    scale = 1.0 / (d_kq ** 0.5)
    xc = x.astype(compute_dtype)
    q = jnp.dot(xc, (w_query * scale).astype(compute_dtype),
                preferred_element_type=jnp.float32).astype(compute_dtype)
    k = jnp.dot(xc, w_key.astype(compute_dtype),
                preferred_element_type=jnp.float32).astype(compute_dtype)
    v = jnp.dot(xc, w_value.astype(compute_dtype),
                preferred_element_type=jnp.float32).astype(compute_dtype)
    s = jnp.dot(q, k.T, preferred_element_type=jnp.float32)
    w = jax.nn.softmax(s, axis=-1)
    return jnp.dot(w.astype(compute_dtype), v,
                   preferred_element_type=jnp.float32)


if __name__ == "__main__":
    # Small shapes implied by the module's forward: x is (seq, d_in).
    seq, d_in, d_out_kq, d_out_v = 8, 32, 16, 16

    key = jax.random.PRNGKey(0)
    kx, kq, kk, kv = jax.random.split(key, 4)

    x = jax.random.uniform(kx, (seq, d_in), dtype=jnp.float32,
                           minval=-0.5, maxval=0.5)
    # torch.rand -> uniform [0, 1)
    w_query = jax.random.uniform(kq, (d_in, d_out_kq), dtype=jnp.float32)
    w_key = jax.random.uniform(kk, (d_in, d_out_kq), dtype=jnp.float32)
    w_value = jax.random.uniform(kv, (d_in, d_out_v), dtype=jnp.float32)

    # f32 compute path vs. the high-precision pure-JAX reference (tolerance
    # covers the EUP approximate reciprocal in the softmax normalization).
    out_f32 = jax.block_until_ready(
        self_attention(x, w_query, w_key, w_value, compute_dtype=jnp.float32))
    ref = self_attention_ref(x, w_query, w_key, w_value)
    assert out_f32.shape == (seq, d_out_v)
    assert jnp.allclose(out_f32, ref, atol=1e-2, rtol=1e-2), \
        "f32 mismatch vs reference"

    # Default bf16 compute path (MXU-native on v5e/v6e/v7x): compare against a
    # reference that reproduces the same bf16 storage roundings, so only
    # implementation noise (online softmax + approx reciprocal) remains.
    out_bf16 = jax.block_until_ready(
        self_attention(x, w_query, w_key, w_value, compute_dtype=jnp.bfloat16))
    ref_bf16 = self_attention_ref_rounded(x, w_query, w_key, w_value,
                                          jnp.bfloat16)
    assert out_bf16.shape == (seq, d_out_v)
    assert jnp.allclose(out_bf16, ref_bf16, atol=5e-2, rtol=5e-2), \
        "bf16 mismatch vs reference"

    # Multi-tile sequence: exercises padding, key masking and the online
    # softmax across several kv tiles (grid 2x2, seq padded 300 -> 512).
    seq2 = 300
    x2 = jax.random.uniform(jax.random.PRNGKey(1), (seq2, d_in),
                            dtype=jnp.float32, minval=-0.5, maxval=0.5)
    out2 = jax.block_until_ready(
        self_attention(x2, w_query, w_key, w_value, compute_dtype=jnp.float32))
    ref2 = self_attention_ref(x2, w_query, w_key, w_value)
    assert out2.shape == (seq2, d_out_v)
    assert jnp.allclose(out2, ref2, atol=1e-2, rtol=1e-2), \
        "multi-tile mismatch vs reference"

    print("KERNEL_OK")
</pallas_src>

<mosaic_0001>
module attributes {stable_mosaic.version = 11 : i64} {
  func.func @kernel(%arg0: i32, %arg1: memref<8x32xf32, #tpu.memory_space<vmem>>, %arg2: memref<32x384xf32, #tpu.memory_space<vmem>>, %arg3: memref<8x128xf32, #tpu.memory_space<vmem>>, %arg4: memref<8x128xf32, #tpu.memory_space<vmem>>, %arg5: memref<8x128xf32, #tpu.memory_space<vmem>>) attributes {dimension_semantics = [#tpu.dimension_semantics<parallel>], iteration_bounds = array<i64: 1>, scalar_prefetch = 0 : i64, scratch_operands = 0 : i64, tpu.core_type = #tpu.core_type<tc>, window_params = [{transform_indices = @transform_0, window_bounds = array<i64: 8, 32>}, {pipeline_mode = #tpu.pipeline_mode<synchronous>, transform_indices = @transform_1, window_bounds = array<i64: 32, 384>}, {transform_indices = @transform_2, window_bounds = array<i64: 8, 128>}, {transform_indices = @transform_3, window_bounds = array<i64: 8, 128>}, {transform_indices = @transform_4, window_bounds = array<i64: 8, 128>}]} {
    %c0 = arith.constant 0 : index
    %c0_0 = arith.constant 0 : index
    %0 = vector.load %arg1[%c0, %c0_0] : memref<8x32xf32, #tpu.memory_space<vmem>>, vector<8x32xf32>
    %c0_1 = arith.constant 0 : index
    %c0_2 = arith.constant 0 : index
    %1 = vector.load %arg2[%c0_1, %c0_2] : memref<32x384xf32, #tpu.memory_space<vmem>>, vector<32x384xf32>
    %cst = arith.constant dense<0.000000e+00> : vector<8x384xf32>
    %2 = tpu.matmul %0, %1, %cst {dimension_numbers = #tpu.dot_dimension_numbers<[1], [0], [0], [1], [0, 0, 1, 1], [], []>} : vector<8x32xf32>, vector<32x384xf32>, vector<8x384xf32> -> vector<8x384xf32>
    %3 = vector.extract_strided_slice %2 {offsets = [0, 0], sizes = [8, 128], strides = [1, 1]} : vector<8x384xf32> to vector<8x128xf32>
    %c0_3 = arith.constant 0 : index
    %c0_4 = arith.constant 0 : index
    %4 = vector.load %arg3[%c0_3, %c0_4] : memref<8x128xf32, #tpu.memory_space<vmem>>, vector<8x128xf32>
    tpu.vector_store %arg3[%c0_3, %c0_4], %3 {strides = array<i32>} : memref<8x128xf32, #tpu.memory_space<vmem>>, vector<8x128xf32>,
    %5 = vector.extract_strided_slice %2 {offsets = [0, 128], sizes = [8, 128], strides = [1, 1]} : vector<8x384xf32> to vector<8x128xf32>
    %c0_5 = arith.constant 0 : index
    %c0_6 = arith.constant 0 : index
    %6 = vector.load %arg4[%c0_5, %c0_6] : memref<8x128xf32, #tpu.memory_space<vmem>>, vector<8x128xf32>
    tpu.vector_store %arg4[%c0_5, %c0_6], %5 {strides = array<i32>} : memref<8x128xf32, #tpu.memory_space<vmem>>, vector<8x128xf32>,
    %7 = vector.extract_strided_slice %2 {offsets = [0, 256], sizes = [8, 128], strides = [1, 1]} : vector<8x384xf32> to vector<8x128xf32>
    %c0_7 = arith.constant 0 : index
    %c0_8 = arith.constant 0 : index
    %8 = vector.load %arg5[%c0_7, %c0_8] : memref<8x128xf32, #tpu.memory_space<vmem>>, vector<8x128xf32>
    tpu.vector_store %arg5[%c0_7, %c0_8], %7 {strides = array<i32>} : memref<8x128xf32, #tpu.memory_space<vmem>>, vector<8x128xf32>,
    return
  }
  func.func @transform_0(%arg0: i32) -> (i32, i32) {
    %c0_i32 = arith.constant 0 : i32
    %c0_i32_0 = arith.constant 0 : i32
    return %arg0, %c0_i32 : i32, i32
  }
  func.func @transform_1(%arg0: i32) -> (i32, i32) {
    %c0_i32 = arith.constant 0 : i32
    %c0_i32_0 = arith.constant 0 : i32
    %c0_i32_1 = arith.constant 0 : i32
    return %c0_i32, %c0_i32_0 : i32, i32
  }
  func.func @transform_2(%arg0: i32) -> (i32, i32) {
    %c0_i32 = arith.constant 0 : i32
    %c0_i32_0 = arith.constant 0 : i32
    return %arg0, %c0_i32 : i32, i32
  }
  func.func @transform_3(%arg0: i32) -> (i32, i32) {
    %c0_i32 = arith.constant 0 : i32
    %c0_i32_0 = arith.constant 0 : i32
    return %arg0, %c0_i32 : i32, i32
  }
  func.func @transform_4(%arg0: i32) -> (i32, i32) {
    %c0_i32 = arith.constant 0 : i32
    %c0_i32_0 = arith.constant 0 : i32
    return %arg0, %c0_i32 : i32, i32
  }
}

</mosaic_0001>

<bundles_post_ra>
// kernel: tpu_custom_call.1
= control target key start
LH: loop header
LB: loop body
LE: loop exit
PB: predicated region body
PF: predicated region fallthrough
CT: control target
= control target key end

     0   :  { %10 = vsyncpa [#allocation3], 0  ;;  %s522_s0 = inlined_call_operand.hbm [shape: f32[8,32], index: 0, kind: input, shape index: {}]   ;;  %s523_s1 = inlined_call_operand.hbm [shape: f32[32,384], index: 1, kind: input, shape index: {}]   ;;  %s524_s2 = inlined_call_operand.hbm [shape: f32[8,128], index: 2, kind: output, shape index: {0}]   ;;  %s525_s3 = inlined_call_operand.hbm [shape: f32[8,128], index: 3, kind: output, shape index: {1}]   ;;  %s526_s4 = inlined_call_operand.hbm [shape: f32[8,128], index: 4, kind: output, shape index: {2}]  }
   0x1   :  { %11 = vsyncpa [#allocation6], 0 }
   0x2   :  { %12 = vsyncpa [#allocation4], 0 }
   0x3   :  { %13 = vsyncpa [#allocation9], 0  ;;  %s406_s15 = smov [#allocation2]   ;;  %s407_s17 = smov [#allocation5]  }
   0x4   :  { %s20_s16 = sshll.u32 %s406_s15, 4  ;;  %s29_s18 = sshll.u32 %s407_s17, 4  ;;  %s21_s16 = int_to_ptr.vmem [resolvable:$true] %s20_s16  ;;  %s441_s18 = int_to_ptr.vmem [resolvable:$true] %s29_s18 }
   0x5   :  { %s288_s21 = scalar_lea.hbm %s522_s0, 128 }
   0x6   :  { %p289_p0 = scmp.ne.s32.totalorder %s522_s0, %s288_s21  ;;  %p292_p1 = scmp.lt.u32.totalorder %s288_s21, %s522_s0 }
   0x8   :  { %p294_p2 = pnand %p292_p1, %p289_p0 }
   0xa   :  { %297 = shalt.err (!%p294_p2)
}
   0xb   :  { %s298_s26 = scalar_lea.vmem %s21_s16, 128  ;;  %p303_p4 = scmp.lt.s32.totalorder %s21_s16, %s21_s16 }
   0xc   :  { %p299_p3 = scmp.ne.s32.totalorder %s21_s16, %s298_s26  ;;  %p304_p5 = scmp.lt.s32.totalorder %s298_s26, %s298_s26 }
   0xe   :  { %p305_p6 = por %p304_p5, %p303_p4 }
  0x10   :  { %p306_p7 = pnand %p305_p6, %p299_p3 }
  0x12   :  { %309 = shalt.err (!%p306_p7)
}
  0x13   :  { %23 = dma.hbm_to_vmem [thread:$0]  %s522_s0, 128, %s21_s16, [#allocation3]  }
  0x14   :  { %s310_s5 = scalar_lea.hbm %s523_s1, 1536 }
  0x15   :  { %p311_p8 = scmp.ne.s32.totalorder %s523_s1, %s310_s5  ;;  %p314_p9 = scmp.lt.u32.totalorder %s310_s5, %s523_s1 }
  0x17   :  { %p316_p10 = pnand %p314_p9, %p311_p8 }
  0x19   :  { %319 = shalt.err (!%p316_p10)
}
  0x1a   :  { %s320_s10 = scalar_lea.vmem %s441_s18, 1536  ;;  %p325_p12 = scmp.lt.s32.totalorder %s441_s18, %s441_s18 }
  0x1b   :  { %p321_p11 = scmp.ne.s32.totalorder %s441_s18, %s320_s10  ;;  %p326_p13 = scmp.lt.s32.totalorder %s320_s10, %s320_s10 }
  0x1d   :  { %p327_p0 = por %p326_p13, %p325_p12 }
  0x1f   :  { %p328_p1 = pnand %p327_p0, %p321_p11 }
  0x21   :  { %331 = shalt.err (!%p328_p1)
}
  0x22   :  { %s408_s0 = smov 384   ;;  %s409_s11 = smov 24  }
  0x23   :  { %35 = dma.hbm_to_vmem [thread:$0]  %s523_s1, 1536, %s441_s18, [#allocation6], %s408_s0, %s408_s0, %s409_s11  }
  0x24   :  { %398 = dma.done.wait [#allocation3], 128  }
  0x25   :  { %399 = vsyncadd [#allocation3], 4294967168 }
  0x26   :  { %400 = dma.done.wait [#allocation6], 1536  }
  0x27   :  { %401 = vsyncadd [#allocation6], 4294965760  ;;  %v410_v0 = vmov 0.0|0.0   ;;  %v411_v1 = vmov 0.0   ;;  %vm412_vm0 = vmmov 0   ;;  %v44_v2 = vld [vmem:[#allocation5 + $0x8] sm:$0xff] }
  0x28   :  { %272 = vmatprep.subr.bf16.mxu1 %v410_v0  ;;  %123 = vmatprep.mubr.f32.mxu0 %v411_v1  ;;  %v47_v3 = vld [vmem:[#allocation5 + $0x20] sm:$0xff]  ;;  %v46_v6 = vld [vmem:[#allocation5 + $0x18] sm:$0xff]  ;;  %v45_v7 = vld [vmem:[#allocation5 + $0x10] sm:$0xff]  ;;  %vm55_vm1 = vcmask 261120   ;;  %s413_s1 = smov [#allocation7]   ;;  %s414_s15 = smov [#allocation8]  }
  0x29   :  { %261 = vmatprep.mubr.msk.f32.mxu1 %vm412_vm0, %v411_v1  ;;  %v43_v4 = vld [vmem:[#allocation5] sm:$0xff]  ;;  %v264_v5 = vpack.c.bf16 %v47_v3, %v44_v2  ;;  %v48_v8 = vld [vmem:[#allocation5 + $0x28] sm:$0xff]  ;;  %v50_v11 = vld [vmem:[#allocation5 + $0x38] sm:$0xff]  ;;  %s209_s14 = sshll.u32 %s413_s1, 4  ;;  %s219_s16 = sshll.u32 %s414_s15, 4  ;;  %s210_s14 = int_to_ptr.vmem [resolvable:$true] %s209_s14  ;;  %s472_s16 = int_to_ptr.vmem [resolvable:$true] %s219_s16 }
  0x2a   :  { %v266_v9 = vpack.c.bf16 %v46_v6, %v43_v4  ;;  %v273_v10 = vpack.c.bf16 %v48_v8, %v45_v7  ;;  %v53_v12 = vld [vmem:[#allocation5 + $0x50] sm:$0xff]  ;;  %v52_v15 = vld [vmem:[#allocation5 + $0x48] sm:$0xff]  ;;  %v51_v16 = vld [vmem:[#allocation5 + $0x40] sm:$0xff]  ;;  %s415_s17 = smov [#allocation10]   ;;  %s332_s19 = scalar_lea.vmem %s210_s14, 128 }
  0x2b   :  { %v49_v13 = vld [vmem:[#allocation5 + $0x30] sm:$0xff]  ;;  %265 = vmatprep.subr.bf16.mxu0 %v264_v5  ;;  %v268_v14 = vpack.c.bf16 %v53_v12, %v50_v11  ;;  %v54_v17 = vld [vmem:[#allocation5 + $0x58] sm:$0xff]  ;;  %s229_s18 = sshll.u32 %s415_s17, 4  ;;  %p333_p2 = scmp.ne.s32.totalorder %s210_s14, %s332_s19  ;;  %s474_s18 = int_to_ptr.vmem [resolvable:$true] %s229_s18 }
  0x2c   :  { %267 = vmatpush1.bf16.msra.mxu0 %v266_v9  ;;  %274 = vmatpush3.bf16.msra.mxu1 %v273_v10  ;;  %v270_v18 = vpack.c.bf16 %v52_v15, %v49_v13  ;;  %v276_v19 = vpack.c.bf16 %v54_v17, %v51_v16  ;;  %v42_v20 = vld [vmem:[#allocation2] sm:$0xff]  ;;  %p337_p3 = scmp.lt.s32.totalorder %s210_s14, %s210_s14  ;;  %p338_p4 = scmp.lt.s32.totalorder %s332_s19, %s332_s19 }
  0x2d   :  { %269 = vmatprep.subr.bf16.mxu0 %v268_v14  ;;  %275 = vmatprep.subr.bf16.mxu1 %v410_v0 }
  0x2e   :  { %p339_p5 = por %p338_p4, %p337_p3 }
  0x30   :  { %271 = vmatpush1.bf16.msra.mxu0 %v270_v18  ;;  %277 = vmatpush3.bf16.msra.mxu1 %v276_v19  ;;  %p340_p6 = pnand %p339_p5, %p333_p2 }
  0x33   :  { %246 = vmatmul.mubr.msk.f32.vlgmr.msra.gmra.mrb[0].mxu0 %vm55_vm1, %v42_v20  ;;  %262 = vmatmul.mubr.msk.f32.vlgmr.msra.gmra.mrb[0].mxu1 %vm55_vm1, %v42_v20 }
 0x106   :  { %v125_v21 = vpop.f32.mrb[0].mxu0  ;;  %v196_v22 = vpop.f32.mrb[0].mxu1 }
 0x107   :  { %200 = vst [vmem:[#allocation7] sm:$0xff] %v125_v21  ;;  %v127_v23 = vpop.f32.mrb[1].mxu0  ;;  %202 = vst [vmem:[#allocation10] sm:$0xff] %v196_v22  ;;  %v263_v24 = vpop.f32.mrb[1].mxu1 }
 0x108   :  { %201 = vst [vmem:[#allocation8] sm:$0xff] %v127_v23 }
 0x109   :  { %343 = shalt.err (!%p340_p6)
}
 0x10a   :  { %s344_s22 = scalar_lea.hbm %s524_s2, 128 }
 0x10b   :  { %p345_p7 = scmp.ne.s32.totalorder %s524_s2, %s344_s22  ;;  %p348_p8 = scmp.lt.u32.totalorder %s344_s22, %s524_s2 }
 0x10d   :  { %p350_p9 = pnand %p348_p8, %p345_p7 }
 0x10f   :  { %353 = shalt.err (!%p350_p9)
}
 0x110   :  { %212 = dma.vmem_to_hbm [thread:$0]  %s210_s14, 128, %s524_s2, [#allocation4]  }
 0x111   :  { %s354_s29 = scalar_lea.vmem %s472_s16, 128  ;;  %p359_p11 = scmp.lt.s32.totalorder %s472_s16, %s472_s16 }
 0x112   :  { %p355_p10 = scmp.ne.s32.totalorder %s472_s16, %s354_s29  ;;  %p360_p12 = scmp.lt.s32.totalorder %s354_s29, %s354_s29 }
 0x114   :  { %p361_p13 = por %p360_p12, %p359_p11 }
 0x116   :  { %p362_p0 = pnand %p361_p13, %p355_p10 }
 0x118   :  { %365 = shalt.err (!%p362_p0)
}
 0x119   :  { %s366_s6 = scalar_lea.hbm %s525_s3, 128 }
 0x11a   :  { %p367_p1 = scmp.ne.s32.totalorder %s525_s3, %s366_s6  ;;  %p370_p2 = scmp.lt.u32.totalorder %s366_s6, %s525_s3 }
 0x11c   :  { %p372_p3 = pnand %p370_p2, %p367_p1 }
 0x11e   :  { %375 = shalt.err (!%p372_p3)
}
 0x11f   :  { %222 = dma.vmem_to_hbm [thread:$0]  %s472_s16, 128, %s525_s3, [#allocation9]  }
 0x120   :  { %s376_s11 = scalar_lea.vmem %s474_s18, 128  ;;  %p381_p5 = scmp.lt.s32.totalorder %s474_s18, %s474_s18 }
 0x121   :  { %p377_p4 = scmp.ne.s32.totalorder %s474_s18, %s376_s11  ;;  %p382_p6 = scmp.lt.s32.totalorder %s376_s11, %s376_s11 }
 0x123   :  { %p383_p7 = por %p382_p6, %p381_p5 }
 0x125   :  { %p384_p8 = pnand %p383_p7, %p377_p4 }
 0x127   :  { %387 = shalt.err (!%p384_p8)
}
 0x128   :  { %s388_s1 = scalar_lea.hbm %s526_s4, 128 }
 0x129   :  { %p389_p9 = scmp.ne.s32.totalorder %s526_s4, %s388_s1  ;;  %p392_p10 = scmp.lt.u32.totalorder %s388_s1, %s526_s4 }
 0x12b   :  { %p394_p11 = pnand %p392_p10, %p389_p9 }
 0x12d   :  { %397 = shalt.err (!%p394_p11)
}
 0x12e   :  { %232 = dma.vmem_to_hbm [thread:$0]  %s474_s18, 128, %s526_s4, [#allocation9]  }
 0x12f   :  { %402 = dma.done.wait [#allocation4], 128  }
 0x130   :  { %403 = vsyncadd [#allocation4], 4294967168 }
 0x131   :  { %404 = dma.done.wait [#allocation9], 256  }
 0x132   :  { %405 = vsyncadd [#allocation9], 4294967040 }
 0x133   :  { %242 = vsyncpa [#allocation3], 1 }
 0x134   :  { %243 = vsyncpa [#allocation6], 1 }
 0x135   :  { %244 = vsyncpa [#allocation4], 1 }
 0x136   :  { %245 = vsyncpa [#allocation9], 1 }

</bundles_post_ra>
